<compile_context>
chip_gen: v5e
topology: v5e:2x2
jax: 0.10.0
libtpu: 0.0.40
codegen_flags: <defaults>
</compile_context>

<pallas_src>
import math

import numpy as np

import jax
import jax.numpy as jnp
from jax import lax
from jax.experimental import pallas as pl
from jax.experimental.pallas import tpu as pltpu


# ----------------------------- Pallas kernel -------------------------------


def _decoder_kernel(x_ref, w1_ref, b1_ref, w4_ref, b4_ref, o_ref):
    # fc1 + tanh : cast x to bf16 in-vreg, bf16 MXU inputs, f32 accumulation,
    # f32 bias / activation.
    x = x_ref[...].astype(jnp.bfloat16)
    h1 = jnp.tanh(
        jnp.dot(x, w1_ref[...], preferred_element_type=jnp.float32)
        + b1_ref[...]
    )
    # fc4 + sigmoid, consuming h1 straight from vregs (no HBM round trip).
    logits = (
        jnp.dot(h1.astype(jnp.bfloat16), w4_ref[...],
                preferred_element_type=jnp.float32)
        + b4_ref[...]
    )
    o_ref[...] = jax.nn.sigmoid(logits).astype(o_ref.dtype)
    # TODO(synk): h2 = tanh(fc2(h1)) exists in the PyTorch module but never
    # feeds the returned value; it is intentionally not computed.


def _choose_tm(M):
    """Row-tile size.

    * M > 1024   : 1024-row tiles (>=85% of HBM roofline per measured tiling
                   data; amortizes the ~0.35 us per-grid-step overhead).
    * 256..1024  : split into two sublane/bf16-aligned halves when cleanly
                   possible so v7x's two TensorCores both get a tile.
    * otherwise  : one full-extent tile (block dims == array dims, always
                   legal for any M).
    """
    if M > 1024:
        return 1024
    if M >= 256 and M % 32 == 0:
        return M // 2
    return M


def decoder_apply(x_f32, w1, b1, w4, b4, out_dtype=jnp.float32):
    """x_f32: (M, K) f32; w1: (K, H) bf16; w4: (H, N) bf16; b*: (1, *) f32."""
    M, K = x_f32.shape
    H = w1.shape[1]
    N = w4.shape[1]
    assert M >= 1, "empty batch"

    tm = _choose_tm(M)
    # Ragged tail handled as a partial block (OOB reads unused, OOB writes
    # dropped) -> no input pad, no post-kernel out[:M] slice copy.
    grid = (pl.cdiv(M, tm),)

    # VMEM budget from the actual footprint: double-buffered x/out tiles plus
    # (double-buffered) weight blocks plus headroom.  Clamped so we never claim
    # all of v7x's 64 MiB physical VMEM per TensorCore.
    out_bytes = jnp.dtype(out_dtype).itemsize
    tile_bytes = 2 * (tm * K * 4 + tm * N * out_bytes)
    weight_bytes = 2 * (K * H * 2 + H * 4 + H * N * 2 + N * 4)
    vmem_limit = int(min(48 << 20,
                         max(16 << 20, tile_bytes + weight_bytes + (8 << 20))))

    return pl.pallas_call(
        _decoder_kernel,
        out_shape=jax.ShapeDtypeStruct((M, N), out_dtype),
        grid=grid,
        in_specs=[
            pl.BlockSpec((tm, K), lambda i: (i, 0)),   # activations, tiled on M
            pl.BlockSpec((K, H), lambda i: (0, 0)),    # fc1 weight, resident
            pl.BlockSpec((1, H), lambda i: (0, 0)),    # fc1 bias
            pl.BlockSpec((H, N), lambda i: (0, 0)),    # fc4 weight, resident
            pl.BlockSpec((1, N), lambda i: (0, 0)),    # fc4 bias
        ],
        out_specs=pl.BlockSpec((tm, N), lambda i: (i, 0)),
        compiler_params=pltpu.CompilerParams(
            dimension_semantics=("parallel",),
            vmem_limit_bytes=vmem_limit,
        ),
    )(x_f32, w1, b1, w4, b4)


# ------------------------------ parameter init -----------------------------


def _init_linear(key, in_f, out_f):
    wkey, bkey = jax.random.split(key)
    bound = 1.0 / math.sqrt(in_f)
    w = jax.random.uniform(wkey, (out_f, in_f), minval=-bound, maxval=bound)
    b = jax.random.uniform(bkey, (out_f,), minval=-bound, maxval=bound)
    return w.astype(jnp.float32), b.astype(jnp.float32)


# ------------------------------- the module --------------------------------


class DecoderPallas:
    def __init__(self, p, l, key):
        latents = int(sum(p['z_dim'][l:l + 2]))
        hidden = int(p['enc_h'][l])
        self.dim = tuple(int(d) for d in p['ldim'][l])
        out_f = int(np.prod(self.dim))

        k1, k2, k4 = jax.random.split(key, 3)
        self.fc1 = _init_linear(k1, latents, hidden)
        self.fc2 = _init_linear(k2, hidden, hidden)   # parity with PyTorch; unused in output
        self.fc4 = _init_linear(k4, hidden, out_f)

        # Hoisted, matmul-ready layouts (done once, not per forward call).
        self.w1_mm = jnp.asarray(self.fc1[0].T, dtype=jnp.bfloat16)   # (latents, hidden)
        self.b1_mm = self.fc1[1].reshape(1, -1)                       # (1, hidden) f32
        self.w4_mm = jnp.asarray(self.fc4[0].T, dtype=jnp.bfloat16)   # (hidden, out_f)
        self.b4_mm = self.fc4[1].reshape(1, -1)                       # (1, out_f) f32

        self._latents = latents

    def __call__(self, x, out_dtype=jnp.float32):
        # bf16 cast of x happens inside the kernel (no extra XLA pass).
        x2d = x.reshape(-1, self._latents).astype(jnp.float32)
        out = decoder_apply(x2d, self.w1_mm, self.b1_mm, self.w4_mm, self.b4_mm,
                            out_dtype=out_dtype)
        return out.reshape(-1, *self.dim)


# --------------------------- pure-JAX reference ----------------------------


def reference_decoder(dec, x):
    w1, b1 = dec.fc1
    w4, b4 = dec.fc4
    x2d = x.reshape(-1, w1.shape[1])
    h1 = jnp.tanh(jnp.dot(x2d, w1.T, precision=lax.Precision.HIGHEST) + b1)
    out = jax.nn.sigmoid(jnp.dot(h1, w4.T, precision=lax.Precision.HIGHEST) + b4)
    return out.reshape(-1, *dec.dim)


# ----------------------------------- main -----------------------------------


if __name__ == "__main__":
    # Small config consistent with the module:
    #   latents = sum(z_dim[0:2]) = 32, hidden = enc_h[0] = 128,
    #   output dim = ldim[0] = (4, 16, 16) -> prod = 1024.
    p = {'z_dim': [16, 16], 'enc_h': [128], 'ldim': [(4, 16, 16)]}
    key = jax.random.PRNGKey(0)
    pkey, xkey = jax.random.split(key)

    dec = DecoderPallas(p, l=0, key=pkey)

    x = jax.random.normal(xkey, (8, 32), dtype=jnp.float32)   # (batch, latents)

    out = jax.block_until_ready(dec(x))
    assert out.shape == (8, 4, 16, 16), out.shape
    assert out.dtype == jnp.float32

    ref = jax.block_until_ready(reference_decoder(dec, x))
    err = float(np.max(np.abs(np.asarray(out) - np.asarray(ref))))
    assert np.allclose(np.asarray(out), np.asarray(ref), rtol=2e-2, atol=2e-2), err

    print("KERNEL_OK")
</pallas_src>

<mosaic_0001>
module attributes {stable_mosaic.version = 11 : i64} {
  func.func @_decoder_kernel(%arg0: i32, %arg1: memref<8x32xf32, #tpu.memory_space<vmem>>, %arg2: memref<32x128xbf16, #tpu.memory_space<vmem>>, %arg3: memref<1x128xf32, #tpu.memory_space<vmem>>, %arg4: memref<128x1024xbf16, #tpu.memory_space<vmem>>, %arg5: memref<1x1024xf32, #tpu.memory_space<vmem>>, %arg6: memref<8x1024xf32, #tpu.memory_space<vmem>>) attributes {dimension_semantics = [#tpu.dimension_semantics<parallel>], iteration_bounds = array<i64: 1>, scalar_prefetch = 0 : i64, scratch_operands = 0 : i64, tpu.core_type = #tpu.core_type<tc>, window_params = [{transform_indices = @transform_0, window_bounds = array<i64: 8, 32>}, {pipeline_mode = #tpu.pipeline_mode<synchronous>, transform_indices = @transform_1, window_bounds = array<i64: 32, 128>}, {pipeline_mode = #tpu.pipeline_mode<synchronous>, transform_indices = @transform_2, window_bounds = array<i64: 1, 128>}, {pipeline_mode = #tpu.pipeline_mode<synchronous>, transform_indices = @transform_3, window_bounds = array<i64: 128, 1024>}, {pipeline_mode = #tpu.pipeline_mode<synchronous>, transform_indices = @transform_4, window_bounds = array<i64: 1, 1024>}, {transform_indices = @transform_5, window_bounds = array<i64: 8, 1024>}]} {
    %c0 = arith.constant 0 : index
    %c0_0 = arith.constant 0 : index
    %0 = vector.load %arg1[%c0, %c0_0] : memref<8x32xf32, #tpu.memory_space<vmem>>, vector<8x32xf32>
    %1 = arith.truncf %0 : vector<8x32xf32> to vector<8x32xbf16>
    %c0_1 = arith.constant 0 : index
    %c0_2 = arith.constant 0 : index
    %2 = vector.load %arg2[%c0_1, %c0_2] : memref<32x128xbf16, #tpu.memory_space<vmem>>, vector<32x128xbf16>
    %cst = arith.constant dense<0.000000e+00> : vector<8x128xf32>
    %3 = tpu.matmul %1, %2, %cst {dimension_numbers = #tpu.dot_dimension_numbers<[1], [0], [0], [1], [0, 0, 1, 1], [], []>} : vector<8x32xbf16>, vector<32x128xbf16>, vector<8x128xf32> -> vector<8x128xf32>
    %c0_3 = arith.constant 0 : index
    %c0_4 = arith.constant 0 : index
    %4 = vector.load %arg3[%c0_3, %c0_4] : memref<1x128xf32, #tpu.memory_space<vmem>>, vector<1x128xf32>
    %5 = vector.broadcast %4 : vector<1x128xf32> to vector<8x128xf32>
    %6 = arith.addf %3, %5 : vector<8x128xf32>
    %7 = math.tanh %6 : vector<8x128xf32>
    %8 = arith.truncf %7 : vector<8x128xf32> to vector<8x128xbf16>
    %c0_5 = arith.constant 0 : index
    %c0_6 = arith.constant 0 : index
    %9 = vector.load %arg4[%c0_5, %c0_6] : memref<128x1024xbf16, #tpu.memory_space<vmem>>, vector<128x1024xbf16>
    %cst_7 = arith.constant dense<0.000000e+00> : vector<8x1024xf32>
    %10 = tpu.matmul %8, %9, %cst_7 {dimension_numbers = #tpu.dot_dimension_numbers<[1], [0], [0], [1], [0, 0, 1, 1], [], []>} : vector<8x128xbf16>, vector<128x1024xbf16>, vector<8x1024xf32> -> vector<8x1024xf32>
    %c0_8 = arith.constant 0 : index
    %c0_9 = arith.constant 0 : index
    %11 = vector.load %arg5[%c0_8, %c0_9] : memref<1x1024xf32, #tpu.memory_space<vmem>>, vector<1x1024xf32>
    %12 = vector.broadcast %11 : vector<1x1024xf32> to vector<8x1024xf32>
    %13 = arith.addf %10, %12 : vector<8x1024xf32>
    %14 = arith.negf %13 : vector<8x1024xf32>
    %15 = math.exp %14 : vector<8x1024xf32>
    %cst_10 = arith.constant 1.000000e+00 : f32
    %16 = vector.broadcast %cst_10 : f32 to vector<8x1024xf32>
    %17 = arith.addf %16, %15 : vector<8x1024xf32>
    %18 = arith.divf %16, %17 : vector<8x1024xf32>
    %c0_11 = arith.constant 0 : index
    %c0_12 = arith.constant 0 : index
    %19 = vector.load %arg6[%c0_11, %c0_12] : memref<8x1024xf32, #tpu.memory_space<vmem>>, vector<8x1024xf32>
    tpu.vector_store %arg6[%c0_11, %c0_12], %18 {strides = array<i32>} : memref<8x1024xf32, #tpu.memory_space<vmem>>, vector<8x1024xf32>,
    return
  }
  func.func @transform_0(%arg0: i32) -> (i32, i32) {
    %c0_i32 = arith.constant 0 : i32
    %c0_i32_0 = arith.constant 0 : i32
    return %arg0, %c0_i32 : i32, i32
  }
  func.func @transform_1(%arg0: i32) -> (i32, i32) {
    %c0_i32 = arith.constant 0 : i32
    %c0_i32_0 = arith.constant 0 : i32
    %c0_i32_1 = arith.constant 0 : i32
    return %c0_i32, %c0_i32_0 : i32, i32
  }
  func.func @transform_2(%arg0: i32) -> (i32, i32) {
    %c0_i32 = arith.constant 0 : i32
    %c0_i32_0 = arith.constant 0 : i32
    %c0_i32_1 = arith.constant 0 : i32
    return %c0_i32, %c0_i32_0 : i32, i32
  }
  func.func @transform_3(%arg0: i32) -> (i32, i32) {
    %c0_i32 = arith.constant 0 : i32
    %c0_i32_0 = arith.constant 0 : i32
    %c0_i32_1 = arith.constant 0 : i32
    return %c0_i32, %c0_i32_0 : i32, i32
  }
  func.func @transform_4(%arg0: i32) -> (i32, i32) {
    %c0_i32 = arith.constant 0 : i32
    %c0_i32_0 = arith.constant 0 : i32
    %c0_i32_1 = arith.constant 0 : i32
    return %c0_i32, %c0_i32_0 : i32, i32
  }
  func.func @transform_5(%arg0: i32) -> (i32, i32) {
    %c0_i32 = arith.constant 0 : i32
    %c0_i32_0 = arith.constant 0 : i32
    return %arg0, %c0_i32 : i32, i32
  }
}

</mosaic_0001>

<bundles_post_ra>
// kernel: tpu_custom_call.1
= control target key start
LH: loop header
LB: loop body
LE: loop exit
PB: predicated region body
PF: predicated region fallthrough
CT: control target
= control target key end

     0   :  { %10 = vsyncpa [#allocation3], 0  ;;  %s1430_s0 = inlined_call_operand.hbm [shape: f32[8,32], index: 0, kind: input, shape index: {}]   ;;  %s1431_s1 = inlined_call_operand.hbm [shape: bf16[32,128], index: 1, kind: input, shape index: {}]   ;;  %s1432_s2 = inlined_call_operand.vmem [shape: f32[1,128], index: 2, kind: input, shape index: {}]   ;;  %s1433_s3 = inlined_call_operand.hbm [shape: bf16[128,1024], index: 3, kind: input, shape index: {}]   ;;  %s1434_s4 = inlined_call_operand.hbm [shape: f32[1,1024], index: 4, kind: input, shape index: {}]   ;;  %s1435_s5 = inlined_call_operand.hbm [shape: f32[8,1024], index: 5, kind: output, shape index: {}]  }
   0x1   :  { %11 = vsyncpa [#allocation6], 0 }
   0x2   :  { %12 = vsyncpa [#allocation9], 0  ;;  %s29_s20 = sshll.u32 %s1431_s1, 4  ;;  %s30_s20 = int_to_ptr.hbm [resolvable:$true] %s29_s20 }
   0x3   :  { %13 = vsyncpa [#allocation4], 0  ;;  %s1318_s21 = smov [#allocation5]   ;;  %s19_s25 = sshll.u32 %s1430_s0, 4  ;;  %s20_s25 = int_to_ptr.hbm [resolvable:$true] %s19_s25 }
   0x4   :  { %s31_s22 = sshll.u32 %s1318_s21, 4  ;;  %s1319_s26 = smov 64   ;;  %s32_s22 = int_to_ptr.vmem [resolvable:$true] %s31_s22 }
   0x5   :  { %s1320_s27 = smov 4   ;;  %s1321_s28 = smov [#allocation2]  }
   0x6   :  { %37 = dma.hbm_to_vmem [thread:$0]  %s30_s20, 256, %s32_s22, [#allocation6], %s1319_s26, %s1319_s26, %s1320_s27  }
   0x7   :  { %s21_s29 = sshll.u32 %s1321_s28, 4  ;;  %s44_s7 = sshll.u32 %s1433_s3, 4  ;;  %s22_s29 = int_to_ptr.vmem [resolvable:$true] %s21_s29  ;;  %s45_s7 = int_to_ptr.hbm [resolvable:$true] %s44_s7 }
   0x8   :  { %24 = dma.hbm_to_vmem [thread:$0]  %s20_s25, 128, %s22_s29, [#allocation3]  }
   0x9   :  { %s1322_s1 = smov [#allocation7]   ;;  %s58_s0 = sshll.u32 %s1434_s4, 4  ;;  %s59_s0 = int_to_ptr.hbm [resolvable:$true] %s58_s0 }
   0xa   :  { %s46_s8 = sshll.u32 %s1322_s1, 4  ;;  %s1323_s11 = smov 512   ;;  %s47_s8 = int_to_ptr.vmem [resolvable:$true] %s46_s8 }
   0xb   :  { %s1324_s12 = smov 32   ;;  %s1325_s13 = smov [#allocation8]  }
   0xc   :  { %52 = dma.hbm_to_vmem [thread:$0]  %s45_s7, 8192, %s47_s8, [#allocation6], %s1323_s11, %s1323_s11, %s1324_s12  }
   0xd   :  { %s60_s14 = sshll.u32 %s1325_s13, 4  ;;  %s61_s14 = int_to_ptr.vmem [resolvable:$true] %s60_s14 }
   0xe   :  { %63 = dma.hbm_to_vmem [thread:$0]  %s59_s0, 128, %s61_s14, [#allocation9]  }
   0xf   :  { %1310 = dma.done.wait [#allocation3], 128  }
  0x10   :  { %1311 = vsyncadd [#allocation3], 4294967168 }
  0x11   :  { %1312 = dma.done.wait [#allocation6], 8448  }
  0x12   :  { %1313 = vsyncadd [#allocation6], 4294958848 }
  0x13   :  { %1314 = dma.done.wait [#allocation9], 128  }
  0x14   :  { %1315 = vsyncadd [#allocation9], 4294967168  ;;  %v1081_v0 = vld [vmem:[#allocation5 + $0x8] sm:$0xff]  ;;  %v1080_v1 = vld [vmem:[#allocation5] sm:$0xff]  ;;  %vm103_vm0 = vcmask 261120   ;;  %s795_s18 = sshll.u32 %s1435_s5, 4  ;;  %s796_s18 = int_to_ptr.hbm [resolvable:$true] %s795_s18 }
  0x15   :  { %v81_v2 = vld [vmem:[#allocation2] sm:$0xff]  ;;  %v1042_v3 = vld [vmem:[#allocation7 + $0x1c0] sm:$0xf]  ;;  %v1138_v5 = vld [vmem:[#allocation7 + $0x1c4] sm:$0xf]  ;;  %113 = vmatpush.bf16.msra.mxu0 %v1081_v0 }
  0x16   :  { %v1142_v4 = vld [vmem:[#allocation7 + $0x1dc] sm:$0xf0]  ;;  %v1044_v7 = vld [vmem:[#allocation7 + $0x1e0] sm:$0xf0]  ;;  %v1050_v8 = vld [vmem:[#allocation7 + $0x1c8] sm:$0xf]  ;;  %v82_v19 = vpack.c.bf16 %v81_v2, %v81_v2 }
  0x17   :  { %v1043_v6 = vor.u32 %v1142_v4, %v1042_v3  ;;  %v1143_v9 = vld [vmem:[#allocation7 + $0x1e4] sm:$0xf0]  ;;  %v1047_v10 = vor.u32 %v1138_v5, %v1044_v7  ;;  %v1139_v12 = vld [vmem:[#allocation7 + $0x1cc] sm:$0xf]  ;;  %v1010_v14 = vld [vmem:[#allocation7 + $0x180] sm:$0xf] }
  0x18   :  { %v1051_v11 = vor.u32 %v1143_v9, %v1050_v8  ;;  %v1052_v13 = vld [vmem:[#allocation7 + $0x1e8] sm:$0xf0]  ;;  %v1134_v16 = vld [vmem:[#allocation7 + $0x19c] sm:$0xf0]  ;;  %v1130_v17 = vld [vmem:[#allocation7 + $0x184] sm:$0xf] }
  0x19   :  { %524 = vmatpush.bf16.msra.mxu1 %v1043_v6  ;;  %v1055_v15 = vor.u32 %v1139_v12, %v1052_v13  ;;  %v1012_v18 = vld [vmem:[#allocation7 + $0x1a0] sm:$0xf0]  ;;  %537 = vmatpush.bf16.msra.mxu2 %v1047_v10  ;;  %v1011_v20 = vor.u32 %v1134_v16, %v1010_v14  ;;  %v1018_v22 = vld [vmem:[#allocation7 + $0x188] sm:$0xf]  ;;  %v1131_v24 = vld [vmem:[#allocation7 + $0x18c] sm:$0xf] }
  0x1a   :  { %550 = vmatpush.bf16.msra.mxu3 %v1051_v11  ;;  %v1015_v21 = vor.u32 %v1130_v17, %v1012_v18  ;;  %v1135_v23 = vld [vmem:[#allocation7 + $0x1a4] sm:$0xf0]  ;;  %114 = vmatpush.bf16.msra.mxu0 %v1080_v1  ;;  %v1020_v26 = vld [vmem:[#allocation7 + $0x1a8] sm:$0xf0]  ;;  %v978_v27 = vld [vmem:[#allocation7 + $0x140] sm:$0xf] }
  0x1b   :  { %v1019_v25 = vor.u32 %v1135_v23, %v1018_v22  ;;  %v1126_v28 = vld [vmem:[#allocation7 + $0x15c] sm:$0xf0]  ;;  %v1023_v29 = vor.u32 %v1131_v24, %v1020_v26  ;;  %v1122_v30 = vld [vmem:[#allocation7 + $0x144] sm:$0xf]  ;;  %v986_v32 = vld [vmem:[#allocation7 + $0x148] sm:$0xf] }
  0x1c   :  { %v980_v31 = vld [vmem:[#allocation7 + $0x160] sm:$0xf0]  ;;  %v979_v33 = vor.u32 %v1126_v28, %v978_v27  ;;  %v1127_v34 = vld [vmem:[#allocation7 + $0x164] sm:$0xf0]  ;;  %v1123_v35 = vld [vmem:[#allocation7 + $0x14c] sm:$0xf] }
  0x1d   :  { %525 = vmatpush.bf16.msra.mxu1 %v1011_v20  ;;  %v988_v36 = vld [vmem:[#allocation7 + $0x168] sm:$0xf0]  ;;  %815 = vmatmul.msk.bf16.vlgmr.msra.gmra.mxu0 %vm103_vm0, %v82_v19  ;;  %v983_v37 = vor.u32 %v1122_v30, %v980_v31  ;;  %v946_v38 = vld [vmem:[#allocation7 + $0x100] sm:$0xf]  ;;  %v987_v40 = vor.u32 %v1127_v34, %v986_v32  ;;  %v1114_v41 = vld [vmem:[#allocation7 + $0x104] sm:$0xf] }
  0x1e   :  { %563 = vmatpush.bf16.msrb.mxu0 %v1055_v15  ;;  %538 = vmatpush.bf16.msra.mxu2 %v1015_v21  ;;  %v1118_v39 = vld [vmem:[#allocation7 + $0x11c] sm:$0xf0]  ;;  %v948_v42 = vld [vmem:[#allocation7 + $0x120] sm:$0xf0]  ;;  %v991_v43 = vor.u32 %v1123_v35, %v988_v36  ;;  %v954_v44 = vld [vmem:[#allocation7 + $0x108] sm:$0xf] }
  0x1f   :  { %551 = vmatpush.bf16.msra.mxu3 %v1019_v25  ;;  %v1119_v45 = vld [vmem:[#allocation7 + $0x124] sm:$0xf0]  ;;  %v947_v46 = vor.u32 %v1118_v39, %v946_v38  ;;  %v1115_v47 = vld [vmem:[#allocation7 + $0x10c] sm:$0xf]  ;;  %v951_v49 = vor.u32 %v1114_v41, %v948_v42  ;;  %v914_v50 = vld [vmem:[#allocation7 + $0xc0] sm:$0xf] }
  0x20   :  { %v956_v48 = vld [vmem:[#allocation7 + $0x128] sm:$0xf0]  ;;  %v1110_v51 = vld [vmem:[#allocation7 + $0xdc] sm:$0xf0]  ;;  %v955_v52 = vor.u32 %v1119_v45, %v954_v44  ;;  %v1106_v53 = vld [vmem:[#allocation7 + $0xc4] sm:$0xf] }
  0x21   :  { %526 = vmatpush.bf16.msra.mxu1 %v979_v33  ;;  %v916_v54 = vld [vmem:[#allocation7 + $0xe0] sm:$0xf0]  ;;  %v959_v55 = vor.u32 %v1115_v47, %v956_v48  ;;  %v922_v56 = vld [vmem:[#allocation7 + $0xc8] sm:$0xf]  ;;  %v915_v58 = vor.u32 %v1110_v51, %v914_v50  ;;  %v1107_v59 = vld [vmem:[#allocation7 + $0xcc] sm:$0xf] }
  0x22   :  { %564 = vmatpush.bf16.msrb.mxu0 %v1023_v29  ;;  %539 = vmatpush.bf16.msra.mxu2 %v983_v37  ;;  %v1111_v57 = vld [vmem:[#allocation7 + $0xe4] sm:$0xf0]  ;;  %v924_v60 = vld [vmem:[#allocation7 + $0xe8] sm:$0xf0]  ;;  %v919_v61 = vor.u32 %v1106_v53, %v916_v54  ;;  %v882_v62 = vld [vmem:[#allocation7 + $0x80] sm:$0xf] }
  0x23   :  { %552 = vmatpush.bf16.msra.mxu3 %v987_v40  ;;  %v1102_v63 = vld [vmem:[#allocation7 + $0x9c] sm:$0xf0]  ;;  %v923_v0 = vor.u32 %v1111_v57, %v922_v56  ;;  %v1098_v1 = vld [vmem:[#allocation7 + $0x84] sm:$0xf]  ;;  %v927_v3 = vor.u32 %v1107_v59, %v924_v60  ;;  %v890_v4 = vld [vmem:[#allocation7 + $0x88] sm:$0xf] }
  0x24   :  { %v884_v2 = vld [vmem:[#allocation7 + $0xa0] sm:$0xf0]  ;;  %v1103_v5 = vld [vmem:[#allocation7 + $0xa4] sm:$0xf0]  ;;  %v883_v6 = vor.u32 %v1102_v63, %v882_v62  ;;  %v1099_v7 = vld [vmem:[#allocation7 + $0x8c] sm:$0xf] }
  0x25   :  { %527 = vmatpush.bf16.msra.mxu1 %v947_v46  ;;  %v892_v8 = vld [vmem:[#allocation7 + $0xa8] sm:$0xf0]  ;;  %v887_v9 = vor.u32 %v1098_v1, %v884_v2  ;;  %v850_v10 = vld [vmem:[#allocation7 + $0x40] sm:$0xf]  ;;  %v891_v12 = vor.u32 %v1103_v5, %v890_v4  ;;  %v1090_v13 = vld [vmem:[#allocation7 + $0x44] sm:$0xf] }
  0x26   :  { %565 = vmatpush.bf16.msrb.mxu0 %v991_v43  ;;  %540 = vmatpush.bf16.msra.mxu2 %v951_v49  ;;  %v1094_v11 = vld [vmem:[#allocation7 + $0x5c] sm:$0xf0]  ;;  %v852_v14 = vld [vmem:[#allocation7 + $0x60] sm:$0xf0]  ;;  %v858_v15 = vld [vmem:[#allocation7 + $0x48] sm:$0xf]  ;;  %v895_v16 = vor.u32 %v1099_v7, %v892_v8 }
  0x27   :  { %553 = vmatpush.bf16.msra.mxu3 %v955_v52  ;;  %v1095_v17 = vld [vmem:[#allocation7 + $0x64] sm:$0xf0]  ;;  %v1091_v18 = vld [vmem:[#allocation7 + $0x4c] sm:$0xf]  ;;  %v851_v20 = vor.u32 %v1094_v11, %v850_v10  ;;  %v818_v21 = vld [vmem:[#allocation7] sm:$0xf]  ;;  %v855_v24 = vor.u32 %v1090_v13, %v852_v14 }
  0x28   :  { %v860_v19 = vld [vmem:[#allocation7 + $0x68] sm:$0xf0]  ;;  %v1086_v22 = vld [vmem:[#allocation7 + $0x1c] sm:$0xf0]  ;;  %v1082_v23 = vld [vmem:[#allocation7 + $0x4] sm:$0xf]  ;;  %v859_v27 = vor.u32 %v1095_v17, %v858_v15 }
  0x29   :  { %528 = vmatpush.bf16.msra.mxu1 %v915_v58  ;;  %v820_v25 = vld [vmem:[#allocation7 + $0x20] sm:$0xf0]  ;;  %v826_v26 = vld [vmem:[#allocation7 + $0x8] sm:$0xf]  ;;  %v1058_v29 = vld [vmem:[#allocation7 + $0x1d0] sm:$0xf]  ;;  %v863_v31 = vor.u32 %v1091_v18, %v860_v19  ;;  %v819_v35 = vor.u32 %v1086_v22, %v818_v21 }
  0x2a   :  { %566 = vmatpush.bf16.msrb.mxu0 %v959_v55  ;;  %541 = vmatpush.bf16.msra.mxu2 %v919_v61  ;;  %v1087_v28 = vld [vmem:[#allocation7 + $0x24] sm:$0xf0]  ;;  %v1144_v30 = vld [vmem:[#allocation7 + $0x1ec] sm:$0xf0]  ;;  %v1083_v32 = vld [vmem:[#allocation7 + $0xc] sm:$0xf]  ;;  %v823_v39 = vor.u32 %v1082_v23, %v820_v25 }
  0x2b   :  { %554 = vmatpush.bf16.msra.mxu3 %v923_v0  ;;  %v1140_v33 = vld [vmem:[#allocation7 + $0x1d4] sm:$0xf]  ;;  %v828_v36 = vld [vmem:[#allocation7 + $0x28] sm:$0xf0]  ;;  %v1066_v37 = vld [vmem:[#allocation7 + $0x1d8] sm:$0xf]  ;;  %v1059_v40 = vor.u32 %v1144_v30, %v1058_v29  ;;  %v827_v43 = vor.u32 %v1087_v28, %v826_v26 }
  0x2c   :  { %v1060_v34 = vld [vmem:[#allocation7 + $0x1f0] sm:$0xf0]  ;;  %v1145_v38 = vld [vmem:[#allocation7 + $0x1f4] sm:$0xf0]  ;;  %v1141_v41 = vld [vmem:[#allocation7 + $0x1dc] sm:$0xf]  ;;  %v831_v45 = vor.u32 %v1083_v32, %v828_v36 }
  0x2d   :  { %529 = vmatpush.bf16.msra.mxu1 %v883_v6  ;;  %v1068_v42 = vld [vmem:[#allocation7 + $0x1f8] sm:$0xf0]  ;;  %v1063_v44 = vor.u32 %v1140_v33, %v1060_v34  ;;  %v1067_v46 = vor.u32 %v1145_v38, %v1066_v37  ;;  %v1026_v48 = vld [vmem:[#allocation7 + $0x190] sm:$0xf]  ;;  %v1132_v50 = vld [vmem:[#allocation7 + $0x194] sm:$0xf] }
  0x2e   :  { %567 = vmatpush.bf16.msrb.mxu0 %v927_v3  ;;  %542 = vmatpush.bf16.msra.mxu2 %v887_v9  ;;  %v1071_v47 = vor.u32 %v1141_v41, %v1068_v42  ;;  %v1136_v49 = vld [vmem:[#allocation7 + $0x1ac] sm:$0xf0]  ;;  %v1028_v52 = vld [vmem:[#allocation7 + $0x1b0] sm:$0xf0]  ;;  %v1034_v53 = vld [vmem:[#allocation7 + $0x198] sm:$0xf] }
  0x2f   :  { %555 = vmatpush.bf16.msra.mxu3 %v891_v12  ;;  %v1027_v51 = vor.u32 %v1136_v49, %v1026_v48  ;;  %v1137_v54 = vld [vmem:[#allocation7 + $0x1b4] sm:$0xf0]  ;;  %v1031_v55 = vor.u32 %v1132_v50, %v1028_v52  ;;  %v1133_v57 = vld [vmem:[#allocation7 + $0x19c] sm:$0xf]  ;;  %v994_v60 = vld [vmem:[#allocation7 + $0x150] sm:$0xf] }
  0x30   :  { %v1035_v56 = vor.u32 %v1137_v54, %v1034_v53  ;;  %v1036_v58 = vld [vmem:[#allocation7 + $0x1b8] sm:$0xf0]  ;;  %v1128_v61 = vld [vmem:[#allocation7 + $0x16c] sm:$0xf0]  ;;  %v1124_v62 = vld [vmem:[#allocation7 + $0x154] sm:$0xf] }
  0x31   :  { %530 = vmatpush.bf16.msra.mxu1 %v851_v20  ;;  %v1039_v59 = vor.u32 %v1133_v57, %v1036_v58  ;;  %v995_v63 = vor.u32 %v1128_v61, %v994_v60  ;;  %v996_v0 = vld [vmem:[#allocation7 + $0x170] sm:$0xf0]  ;;  %v1002_v1 = vld [vmem:[#allocation7 + $0x158] sm:$0xf]  ;;  %v1125_v5 = vld [vmem:[#allocation7 + $0x15c] sm:$0xf] }
  0x32   :  { %568 = vmatpush.bf16.msrb.mxu0 %v895_v16  ;;  %543 = vmatpush.bf16.msra.mxu2 %v855_v24  ;;  %v1129_v2 = vld [vmem:[#allocation7 + $0x174] sm:$0xf0]  ;;  %v999_v3 = vor.u32 %v1124_v62, %v996_v0  ;;  %v1004_v6 = vld [vmem:[#allocation7 + $0x178] sm:$0xf0]  ;;  %v962_v8 = vld [vmem:[#allocation7 + $0x110] sm:$0xf] }
  0x33   :  { %556 = vmatpush.bf16.msra.mxu3 %v859_v27  ;;  %v1003_v4 = vor.u32 %v1129_v2, %v1002_v1  ;;  %v1007_v7 = vor.u32 %v1125_v5, %v1004_v6  ;;  %v1120_v9 = vld [vmem:[#allocation7 + $0x12c] sm:$0xf0]  ;;  %v1116_v10 = vld [vmem:[#allocation7 + $0x114] sm:$0xf]  ;;  %v970_v13 = vld [vmem:[#allocation7 + $0x118] sm:$0xf] }
  0x34   :  { %v963_v11 = vor.u32 %v1120_v9, %v962_v8  ;;  %v964_v12 = vld [vmem:[#allocation7 + $0x130] sm:$0xf0]  ;;  %v1121_v14 = vld [vmem:[#allocation7 + $0x134] sm:$0xf0]  ;;  %v1117_v17 = vld [vmem:[#allocation7 + $0x11c] sm:$0xf] }
  0x35   :  { %531 = vmatpush.bf16.msra.mxu1 %v819_v35  ;;  %v967_v15 = vor.u32 %v1116_v10, %v964_v12  ;;  %v971_v16 = vor.u32 %v1121_v14, %v970_v13  ;;  %v972_v18 = vld [vmem:[#allocation7 + $0x138] sm:$0xf0]  ;;  %v930_v20 = vld [vmem:[#allocation7 + $0xd0] sm:$0xf]  ;;  %v1108_v22 = vld [vmem:[#allocation7 + $0xd4] sm:$0xf] }
  0x36   :  { %569 = vmatpush.bf16.msrb.mxu0 %v863_v31  ;;  %544 = vmatpush.bf16.msra.mxu2 %v823_v39  ;;  %v975_v19 = vor.u32 %v1117_v17, %v972_v18  ;;  %v1112_v21 = vld [vmem:[#allocation7 + $0xec] sm:$0xf0]  ;;  %v932_v24 = vld [vmem:[#allocation7 + $0xf0] sm:$0xf0]  ;;  %v938_v25 = vld [vmem:[#allocation7 + $0xd8] sm:$0xf] }
  0x37   :  { %557 = vmatpush.bf16.msra.mxu3 %v827_v43  ;;  %v931_v23 = vor.u32 %v1112_v21, %v930_v20  ;;  %v1113_v26 = vld [vmem:[#allocation7 + $0xf4] sm:$0xf0]  ;;  %v935_v27 = vor.u32 %v1108_v22, %v932_v24  ;;  %v1109_v29 = vld [vmem:[#allocation7 + $0xdc] sm:$0xf]  ;;  %v898_v31 = vld [vmem:[#allocation7 + $0x90] sm:$0xf] }
  0x38   :  { %v939_v28 = vor.u32 %v1113_v26, %v938_v25  ;;  %v940_v30 = vld [vmem:[#allocation7 + $0xf8] sm:$0xf0]  ;;  %v1104_v33 = vld [vmem:[#allocation7 + $0xac] sm:$0xf0]  ;;  %v1100_v34 = vld [vmem:[#allocation7 + $0x94] sm:$0xf] }
  0x39   :  { %576 = vmatpush.bf16.msrb.mxu1 %v1059_v40  ;;  %v943_v32 = vor.u32 %v1109_v29, %v940_v30  ;;  %v900_v35 = vld [vmem:[#allocation7 + $0xb0] sm:$0xf0]  ;;  %v899_v36 = vor.u32 %v1104_v33, %v898_v31  ;;  %v906_v38 = vld [vmem:[#allocation7 + $0x98] sm:$0xf]  ;;  %v1101_v40 = vld [vmem:[#allocation7 + $0x9c] sm:$0xf] }
  0x3a   :  { %589 = vmatpush.bf16.msrb.mxu2 %v1063_v44  ;;  %570 = vmatpush.bf16.msrb.mxu0 %v831_v45  ;;  %v903_v37 = vor.u32 %v1100_v34, %v900_v35  ;;  %v1105_v39 = vld [vmem:[#allocation7 + $0xb4] sm:$0xf0]  ;;  %v908_v42 = vld [vmem:[#allocation7 + $0xb8] sm:$0xf0]  ;;  %v866_v43 = vld [vmem:[#allocation7 + $0x50] sm:$0xf] }
  0x3b   :  { %602 = vmatpush.bf16.msrb.mxu3 %v1067_v46  ;;  %v907_v41 = vor.u32 %v1105_v39, %v906_v38  ;;  %v1096_v44 = vld [vmem:[#allocation7 + $0x6c] sm:$0xf0]  ;;  %v911_v45 = vor.u32 %v1101_v40, %v908_v42  ;;  %v1092_v46 = vld [vmem:[#allocation7 + $0x54] sm:$0xf]  ;;  %v874_v48 = vld [vmem:[#allocation7 + $0x58] sm:$0xf] }
  0x3c   :  { %v867_v49 = vor.u32 %v1096_v44, %v866_v43  ;;  %v1097_v50 = vld [vmem:[#allocation7 + $0x74] sm:$0xf0]  ;;  %v876_v52 = vld [vmem:[#allocation7 + $0x78] sm:$0xf0]  ;;  %v1084_v57 = vld [vmem:[#allocation7 + $0x14] sm:$0xf] }
  0x3d   :  { %577 = vmatpush.bf16.msrb.mxu1 %v1027_v51  ;;  %v1093_v51 = vld [vmem:[#allocation7 + $0x5c] sm:$0xf]  ;;  %v875_v54 = vor.u32 %v1097_v50, %v874_v48  ;;  %v842_v60 = vld [vmem:[#allocation7 + $0x18] sm:$0xf]  ;;  %v1373_v10 = vld [vmem:[#allocation8] sm:$0xff] }
  0x3e   :  { %615 = vmatpush.bf16.msra.mxu0 %v1071_v47  ;;  %590 = vmatpush.bf16.msrb.mxu2 %v1031_v55  ;;  %v868_v47 = vld [vmem:[#allocation7 + $0x70] sm:$0xf0]  ;;  %v834_v55 = vld [vmem:[#allocation7 + $0x10] sm:$0xf]  ;;  %v879_v58 = vor.u32 %v1093_v51, %v876_v52  ;;  %v1089_v61 = vld [vmem:[#allocation7 + $0x34] sm:$0xf0] }
  0x3f   :  { %603 = vmatpush.bf16.msrb.mxu3 %v1035_v56  ;;  %v871_v53 = vor.u32 %v1092_v46, %v868_v47  ;;  %v1088_v56 = vld [vmem:[#allocation7 + $0x2c] sm:$0xf0]  ;;  %v1085_v62 = vld [vmem:[#allocation7 + $0x1c] sm:$0xf]  ;;  %v843_v2 = vor.u32 %v1089_v61, %v842_v60  ;;  %v191_v12 = vperm.slane %v1373_v10, 3  ;;  %v189_v18 = vperm.slane %v1373_v10, 1 }
  0x40   :  { %v835_v0 = vor.u32 %v1088_v56, %v834_v55  ;;  %v190_v20 = vperm.slane %v1373_v10, 2  ;;  %v192_v33 = vperm.slane %v1373_v10, 4  ;;  %v193_v48 = vperm.slane %v1373_v10, 5 }
  0x41   :  { %578 = vmatpush.bf16.msrb.mxu1 %v995_v63  ;;  %v844_v63 = vld [vmem:[#allocation7 + $0x38] sm:$0xf0] }
  0x42   :  { %616 = vmatpush.bf16.msra.mxu0 %v1039_v59  ;;  %591 = vmatpush.bf16.msrb.mxu2 %v999_v3  ;;  %v836_v59 = vld [vmem:[#allocation7 + $0x30] sm:$0xf0]  ;;  %v847_v3 = vor.u32 %v1085_v62, %v844_v63 }
  0x43   :  { %604 = vmatpush.bf16.msrb.mxu3 %v1003_v4  ;;  %v839_v1 = vor.u32 %v1084_v57, %v836_v59  ;;  %v1155_v4 = vld [vmem:[%s1432_s2] ss:$0 sm:$0xff]  ;;  %s1326_s2 = smov [#allocation10]  }
  0x44   :  { %s793_s15 = sshll.u32 %s1326_s2, 4  ;;  %s794_s15 = int_to_ptr.vmem [resolvable:$true] %s793_s15 }
  0x45   :  { %579 = vmatpush.bf16.msrb.mxu1 %v963_v11  ;;  %v188_v11 = vperm.slane %v1373_v10, 0 }
  0x46   :  { %617 = vmatpush.bf16.msra.mxu0 %v1007_v7  ;;  %592 = vmatpush.bf16.msrb.mxu2 %v967_v15 }
  0x47   :  { %605 = vmatpush.bf16.msrb.mxu3 %v971_v16 }
  0x49   :  { %580 = vmatpush.bf16.msrb.mxu1 %v931_v23 }
  0x4a   :  { %618 = vmatpush.bf16.msra.mxu0 %v975_v19  ;;  %593 = vmatpush.bf16.msrb.mxu2 %v935_v27 }
  0x4b   :  { %606 = vmatpush.bf16.msrb.mxu3 %v939_v28 }
  0x4d   :  { %581 = vmatpush.bf16.msrb.mxu1 %v899_v36 }
  0x4e   :  { %619 = vmatpush.bf16.msra.mxu0 %v943_v32  ;;  %594 = vmatpush.bf16.msrb.mxu2 %v903_v37  ;;  %v195_v37 = vperm.slane %v1373_v10, 7 }
  0x4f   :  { %607 = vmatpush.bf16.msrb.mxu3 %v907_v41 }
  0x51   :  { %582 = vmatpush.bf16.msrb.mxu1 %v867_v49  ;;  %v194_v49 = vperm.slane %v1373_v10, 6 }
  0x52   :  { %620 = vmatpush.bf16.msra.mxu0 %v911_v45  ;;  %595 = vmatpush.bf16.msrb.mxu2 %v871_v53 }
  0x53   :  { %608 = vmatpush.bf16.msrb.mxu3 %v875_v54 }
  0x55   :  { %583 = vmatpush.bf16.msrb.mxu1 %v835_v0 }
  0x56   :  { %621 = vmatpush.bf16.msra.mxu0 %v879_v58  ;;  %596 = vmatpush.bf16.msrb.mxu2 %v839_v1 }
  0x57   :  { %609 = vmatpush.bf16.msrb.mxu3 %v843_v2 }
  0x5a   :  { %622 = vmatpush.bf16.msra.mxu0 %v847_v3 }
  0x9a   :  { %v116_v5 = vpop.f32.mrf.mxu0 }
  0x9b   :  { %v117_v6 = vadd.f32 %v1155_v4, %v116_v5 }
  0x9d   :  { %1156 = vtanh.f32 %v117_v6 }
  0xa2   :  { %v118_v7 = vpop.f32.mrf.mxu0 }
  0xa3   :  { %v1157_v8 = vpop.eup %1156 }
  0xa4   :  { %v121_v9 = vpack.c.bf16 %v1157_v8, %v1157_v8 }
  0xa6   :  { %532 = vmatmul.bf16.vlgmr.msra.gmra.mxu1 %v121_v9  ;;  %545 = vmatmul.bf16.vlgmr.msra.gmra.mxu2 %v121_v9 }
  0xa7   :  { %558 = vmatmul.bf16.vlgmr.msra.gmra.mxu3 %v121_v9  ;;  %571 = vmatmul.bf16.vlgmr.msrb.gmra.mxu0 %v121_v9 }
  0xb6   :  { %584 = vmatmul.bf16.vlgmr.msrb.gmra.mxu1 %v121_v9  ;;  %597 = vmatmul.bf16.vlgmr.msrb.gmra.mxu2 %v121_v9 }
  0xb7   :  { %610 = vmatmul.bf16.vlgmr.msrb.gmra.mxu3 %v121_v9  ;;  %623 = vmatmul.bf16.vlgmr.msra.gmra.mxu0 %v121_v9 }
 0x123   :  { %v533_v13 = vpop.f32.mrf.mxu1 }
 0x124   :  { %v534_v14 = vadd.f32 %v533_v13, %v188_v11  ;;  %v572_v15 = vpop.f32.mrf.mxu0 }
 0x125   :  { %v573_v16 = vadd.f32 %v572_v15, %v191_v12 }
 0x126   :  { %v1072_v17 = vmul.f32 -1.442695, %v534_v14 }
 0x127   :  { %v1075_v19 = vmul.f32 -1.442695, %v573_v16 }
 0x128   :  { %1158 = vpow2.f32 %v1072_v17 }
 0x129   :  { %1160 = vpow2.f32 %v1075_v19  ;;  %v546_v21 = vpop.f32.mrf.mxu2 }
 0x12a   :  { %v547_v22 = vadd.f32 %v546_v21, %v189_v18  ;;  %v559_v23 = vpop.f32.mrf.mxu3 }
 0x12b   :  { %v560_v24 = vadd.f32 %v559_v23, %v190_v20  ;;  %v535_v25 = vpop.f32.mrf.mxu1 }
 0x12c   :  { %v1073_v26 = vmul.f32 -1.442695, %v547_v22  ;;  %v574_v27 = vpop.f32.mrf.mxu0 }
 0x12d   :  { %v1074_v28 = vmul.f32 -1.442695, %v560_v24 }
 0x12e   :  { %v1159_v29 = vpop.eup %1158  ;;  %1162 = vpow2.f32 %v1073_v26 }
 0x12f   :  { %v1161_v30 = vpop.eup %1160  ;;  %v652_v31 = vadd.f32 1.0, %v1159_v29  ;;  %1164 = vpow2.f32 %v1074_v28 }
 0x130   :  { %v1379_v32 = vadd.f32 1.0, %v1161_v30 }
 0x131   :  { %1166 = vrcp.f32 %v652_v31  ;;  %v548_v34 = vpop.f32.mrf.mxu2  ;;  %v669_v43 = vand.u32 2147483647, %v652_v31  ;;  %v671_v52 = vand.u32 2147483648, %v652_v31  ;;  %vm665_vm1 = vweird.f32 %v652_v31 }
 0x132   :  { %1168 = vrcp.f32 %v1379_v32  ;;  %v561_v35 = vpop.f32.mrf.mxu3  ;;  %vm710_vm2 = vweird.f32 %v1379_v32  ;;  %v714_v54 = vand.u32 2147483647, %v1379_v32  ;;  %v716_v58 = vand.u32 2147483648, %v1379_v32 }
 0x133   :  { %v585_v36 = vpop.f32.mrf.mxu1  ;;  %vm1395_vm3 = vcmp.eq.f32.partialorder %v669_v43, 8.507059e+37  ;;  %v672_v2 = vor.u32 1.1754944e-38, %v671_v52 }
 0x134   :  { %v1163_v38 = vpop.eup %1162  ;;  %v586_v39 = vadd.f32 %v585_v36, %v192_v33  ;;  %v624_v40 = vpop.f32.mrf.mxu0  ;;  %vm1400_vm6 = vcmp.eq.f32.partialorder %v714_v54, 8.507059e+37  ;;  %v717_v11 = vor.u32 1.1754944e-38, %v716_v58 }
 0x135   :  { %v1165_v41 = vpop.eup %1164  ;;  %v1384_v42 = vadd.f32 1.0, %v1163_v38  ;;  %v625_v47 = vadd.f32 %v624_v40, %v195_v37 }
 0x136   :  { %v1386_v44 = vadd.f32 1.0, %v1165_v41  ;;  %v1076_v45 = vmul.f32 -1.442695, %v586_v39 }
 0x137   :  { %v1167_v46 = vpop.eup %1166  ;;  %1170 = vrcp.f32 %v1384_v42  ;;  %v1079_v61 = vmul.f32 -1.442695, %v625_v47  ;;  %v684_v14 = vand.u32 2147483647, %v1384_v42  ;;  %v686_v19 = vand.u32 2147483648, %v1384_v42 }
 0x138   :  { %v1169_v50 = vpop.eup %1168  ;;  %v661_v51 = vmul.f32 %v1167_v46, %v652_v31  ;;  %1172 = vrcp.f32 %v1386_v44  ;;  %vm666_vm4 = vweird.f32 %v1167_v46  ;;  %v701_v27 = vand.u32 2147483648, %v1386_v44 }
 0x139   :  { %v706_v53 = vmul.f32 %v1169_v50, %v1379_v32  ;;  %v598_v55 = vpop.f32.mrf.mxu2  ;;  %1174 = vpow2.f32 %v1076_v45  ;;  %vm711_vm5 = vweird.f32 %v1169_v50  ;;  %vm667_vm7 = vmor %vm665_vm1, %vm666_vm4  ;;  %v699_v31 = vand.u32 2147483647, %v1386_v44 }
 0x13a   :  { %v662_v56 = vsub.f32 1.0, %v661_v51  ;;  %v611_v59 = vpop.f32.mrf.mxu3  ;;  %v599_v62 = vadd.f32 %v598_v55, %v193_v48  ;;  %1176 = vpow2.f32 %v1079_v61  ;;  %vm712_vm8 = vmor %vm710_vm2, %vm711_vm5  ;;  %vm680_vm11 = vweird.f32 %v1384_v42 }
 0x13b   :  { %v707_v60 = vsub.f32 1.0, %v706_v53  ;;  %v612_v63 = vadd.f32 %v611_v59, %v194_v49  ;;  %v587_v0 = vpop.f32.mrf.mxu1  ;;  %v687_v35 = vor.u32 1.1754944e-38, %v686_v19  ;;  %vm695_vm13 = vweird.f32 %v1386_v44 }
 0x13c   :  { %v663_v1 = vmul.f32 %v1167_v46, %v662_v56  ;;  %v626_v3 = vpop.f32.mrf.mxu0  ;;  %v1077_v6 = vmul.f32 -1.442695, %v599_v62  ;;  %vm685_vm14 = vcmp.eq.f32.partialorder %v684_v14, 8.507059e+37  ;;  %v702_v39 = vor.u32 1.1754944e-38, %v701_v27 }
 0x13d   :  { %v1171_v4 = vpop.eup %1170  ;;  %v708_v5 = vmul.f32 %v1169_v50, %v707_v60  ;;  %v1078_v7 = vmul.f32 -1.442695, %v612_v63  ;;  %vm700_vm0 = vcmp.eq.f32.partialorder %v699_v31, 8.507059e+37 }
 0x13e   :  { %v1173_v8 = vpop.eup %1172  ;;  %v664_v9 = vadd.f32 %v1167_v46, %v663_v1  ;;  %v676_v12 = vmul.f32 %v1171_v4, %v1384_v42  ;;  %1178 = vpow2.f32 %v1077_v6  ;;  %vm681_vm9 = vweird.f32 %v1171_v4 }
 0x13f   :  { %v709_v13 = vadd.f32 %v1169_v50, %v708_v5  ;;  %v691_v15 = vmul.f32 %v1173_v8, %v1386_v44  ;;  %v1175_v16 = vpop.eup %1174  ;;  %1180 = vpow2.f32 %v1078_v7  ;;  %vm696_vm10 = vweird.f32 %v1173_v8  ;;  %vm682_vm12 = vmor %vm680_vm11, %vm681_vm9 }
 0x140   :  { %v668_v17 = vsel %vm667_vm7, %v1167_v46, %v664_v9  ;;  %v677_v18 = vsub.f32 1.0, %v676_v12  ;;  %v656_v23 = vadd.f32 1.0, %v1175_v16  ;;  %v1177_v29 = vpop.eup %1176  ;;  %vm697_vm15 = vmor %vm695_vm13, %vm696_vm10 }
 0x141   :  { %v673_v20 = vsel %vm1395_vm3, %v672_v2, %v668_v17  ;;  %v713_v21 = vsel %vm712_vm8, %v1169_v50, %v709_v13  ;;  %v692_v22 = vsub.f32 1.0, %v691_v15  ;;  %v600_v24 = vpop.f32.mrf.mxu2  ;;  %v659_v33 = vadd.f32 1.0, %v1177_v29 }
 0x142   :  { %780 = vst [vmem:[#allocation10] sm:$0xff] %v673_v20  ;;  %v718_v25 = vsel %vm1400_vm6, %v717_v11, %v713_v21  ;;  %v678_v26 = vmul.f32 %v1171_v4, %v677_v18  ;;  %v613_v28 = vpop.f32.mrf.mxu3  ;;  %1182 = vrcp.f32 %v656_v23  ;;  %v731_v49 = vand.u32 2147483648, %v656_v23 }
 0x143   :  { %783 = vst [vmem:[#allocation10 + $0x18] sm:$0xff] %v718_v25  ;;  %v693_v30 = vmul.f32 %v1173_v8, %v692_v22  ;;  %1184 = vrcp.f32 %v659_v33  ;;  %v729_v52 = vand.u32 2147483647, %v656_v23  ;;  %v774_v54 = vand.u32 2147483647, %v659_v33 }
 0x144   :  { %v679_v32 = vadd.f32 %v1171_v4, %v678_v26  ;;  %v1179_v34 = vpop.eup %1178  ;;  %vm725_vm2 = vweird.f32 %v656_v23  ;;  %v776_v57 = vand.u32 2147483648, %v659_v33  ;;  %v732_v59 = vor.u32 1.1754944e-38, %v731_v49 }
 0x145   :  { %v694_v36 = vadd.f32 %v1173_v8, %v693_v30  ;;  %v1181_v37 = vpop.eup %1180  ;;  %v657_v45 = vadd.f32 1.0, %v1179_v34  ;;  %vm730_vm5 = vcmp.eq.f32.partialorder %v729_v52, 8.507059e+37  ;;  %vm770_vm6 = vweird.f32 %v659_v33 }
 0x146   :  { %v683_v38 = vsel %vm682_vm12, %v1171_v4, %v679_v32  ;;  %v1420_v42 = vadd.f32 1.0, %v1181_v37  ;;  %vm775_vm7 = vcmp.eq.f32.partialorder %v774_v54, 8.507059e+37  ;;  %v777_v3 = vor.u32 1.1754944e-38, %v776_v57 }
 0x147   :  { %v688_v40 = vsel %vm685_vm14, %v687_v35, %v683_v38  ;;  %v698_v41 = vsel %vm697_vm15, %v1173_v8, %v694_v36  ;;  %1186 = vrcp.f32 %v657_v45  ;;  %v744_v4 = vand.u32 2147483647, %v657_v45 }
 0x148   :  { %781 = vst [vmem:[#allocation10 + $0x8] sm:$0xff] %v688_v40  ;;  %v703_v43 = vsel %vm700_vm0, %v702_v39, %v698_v41  ;;  %v1183_v46 = vpop.eup %1182  ;;  %1188 = vrcp.f32 %v1420_v42  ;;  %v746_v5 = vand.u32 2147483648, %v657_v45  ;;  %v761_v9 = vand.u32 2147483648, %v1420_v42 }
 0x149   :  { %782 = vst [vmem:[#allocation10 + $0x10] sm:$0xff] %v703_v43  ;;  %v721_v47 = vmul.f32 %v1183_v46, %v656_v23  ;;  %v1185_v44 = vpop.eup %1184  ;;  %vm726_vm1 = vweird.f32 %v1183_v46  ;;  %v759_v12 = vand.u32 2147483647, %v1420_v42  ;;  %vm740_vm11 = vweird.f32 %v657_v45 }
 0x14a   :  { %v766_v50 = vmul.f32 %v1185_v44, %v659_v33  ;;  %vm727_vm3 = vmor %vm725_vm2, %vm726_vm1  ;;  %vm771_vm4 = vweird.f32 %v1185_v44  ;;  %v747_v14 = vor.u32 1.1754944e-38, %v746_v5  ;;  %vm755_vm13 = vweird.f32 %v1420_v42 }
 0x14b   :  { %v722_v48 = vsub.f32 1.0, %v721_v47  ;;  %vm772_vm8 = vmor %vm770_vm6, %vm771_vm4  ;;  %vm745_vm14 = vcmp.eq.f32.partialorder %v744_v4, 8.507059e+37  ;;  %v762_v17 = vor.u32 1.1754944e-38, %v761_v9  ;;  %vm760_vm0 = vcmp.eq.f32.partialorder %v759_v12, 8.507059e+37 }
 0x14c   :  { %v767_v53 = vsub.f32 1.0, %v766_v50 }
 0x14d   :  { %v723_v51 = vmul.f32 %v1183_v46, %v722_v48  ;;  %v1187_v55 = vpop.eup %1186 }
 0x14e   :  { %v1189_v58 = vpop.eup %1188  ;;  %v768_v60 = vmul.f32 %v1185_v44, %v767_v53  ;;  %v736_v61 = vmul.f32 %v1187_v55, %v657_v45  ;;  %vm741_vm9 = vweird.f32 %v1187_v55 }
 0x14f   :  { %v724_v56 = vadd.f32 %v1183_v46, %v723_v51  ;;  %v751_v63 = vmul.f32 %v1189_v58, %v1420_v42  ;;  %vm756_vm10 = vweird.f32 %v1189_v58  ;;  %vm742_vm12 = vmor %vm740_vm11, %vm741_vm9 }
 0x150   :  { %v769_v1 = vadd.f32 %v1185_v44, %v768_v60  ;;  %v737_v2 = vsub.f32 1.0, %v736_v61  ;;  %vm757_vm15 = vmor %vm755_vm13, %vm756_vm10 }
 0x151   :  { %v728_v62 = vsel %vm727_vm3, %v1183_v46, %v724_v56  ;;  %v752_v6 = vsub.f32 1.0, %v751_v63 }
 0x152   :  { %v733_v0 = vsel %vm730_vm5, %v732_v59, %v728_v62  ;;  %v773_v7 = vsel %vm772_vm8, %v1185_v44, %v769_v1  ;;  %v738_v8 = vmul.f32 %v1187_v55, %v737_v2 }
 0x153   :  { %784 = vst [vmem:[#allocation10 + $0x20] sm:$0xff] %v733_v0  ;;  %v778_v10 = vsel %vm775_vm7, %v777_v3, %v773_v7  ;;  %v753_v11 = vmul.f32 %v1189_v58, %v752_v6 }
 0x154   :  { %787 = vst [vmem:[#allocation10 + $0x38] sm:$0xff] %v778_v10  ;;  %v739_v13 = vadd.f32 %v1187_v55, %v738_v8 }
 0x155   :  { %v754_v15 = vadd.f32 %v1189_v58, %v753_v11 }
 0x156   :  { %v743_v16 = vsel %vm742_vm12, %v1187_v55, %v739_v13 }
 0x157   :  { %v748_v18 = vsel %vm745_vm14, %v747_v14, %v743_v16  ;;  %v758_v19 = vsel %vm757_vm15, %v1189_v58, %v754_v15 }
 0x158   :  { %785 = vst [vmem:[#allocation10 + $0x28] sm:$0xff] %v748_v18  ;;  %v763_v20 = vsel %vm760_vm0, %v762_v17, %v758_v19 }
 0x159   :  { %786 = vst [vmem:[#allocation10 + $0x30] sm:$0xff] %v763_v20 }
 0x15a   :  { %798 = dma.vmem_to_hbm [thread:$0]  %s794_s15, 1024, %s796_s18, [#allocation4]  }
 0x15b   :  { %1316 = dma.done.wait [#allocation4], 1024  }
 0x15c   :  { %1317 = vsyncadd [#allocation4], 4294966272 }
 0x15d   :  { %803 = vsyncpa [#allocation3], 1 }
 0x15e   :  { %804 = vsyncpa [#allocation6], 1 }
 0x15f   :  { %805 = vsyncpa [#allocation9], 1 }
 0x160   :  { %806 = vsyncpa [#allocation4], 1 }

</bundles_post_ra>
